<compile_context>
chip_gen: v6e
topology: v6e:2x2x1
jax: 0.10.0
libtpu: 0.0.40
codegen_flags: <defaults>
</compile_context>

<pallas_src>
import functools

import jax
import jax.numpy as jnp
from jax.experimental import pallas as pl
from jax.experimental.pallas import tpu as pltpu


def _wgap_kernel(x_ref, w_ref, b_ref, o_ref, acc_ref, *, inv_hw):
    # x_ref  : (b_tile, C, s_tile)   native dtype, VMEM
    # w_ref  : (C, n_pad)            transposed + zero-padded fc weight (native dtype)
    # b_ref  : (1, n_pad)            zero-padded fc bias
    # o_ref  : (b_tile, 1, n_pad)    f32 logits (padded classes)
    # acc_ref: (b_tile, C) f32       pooled-sum accumulator (persists across spatial steps)
    s_idx = pl.program_id(1)

    @pl.when(s_idx == 0)
    def _():
        acc_ref[...] = jnp.zeros_like(acc_ref)

    # Partial spatial sum, f32 accumulation (no whole-tile upcast of x).
    acc_ref[...] += jnp.sum(x_ref[...], axis=-1, dtype=jnp.float32)

    @pl.when(s_idx == pl.num_programs(1) - 1)
    def _():
        pooled = acc_ref[...] * inv_hw                      # exact mean over H*W
        logits = jnp.dot(
            pooled.astype(w_ref.dtype),                     # cast tiny LHS, not the weight
            w_ref[...],
            preferred_element_type=jnp.float32,
        )
        logits = logits + b_ref[...].astype(jnp.float32)
        o_ref[...] = logits[:, None, :].astype(o_ref.dtype)


def _largest_divisor_leq(n, cap):
    cap = max(1, min(n, cap))
    for d in range(cap, 0, -1):
        if n % d == 0:
            return d
    return 1


def _pick_spatial_tile(s_pad, b_tile, c, itemsize, fixed_bytes, budget, max_tile):
    """Largest multiple of 128 dividing s_pad whose double-buffered x block fits."""
    m = s_pad // 128
    best = 128
    for d in range(1, m + 1):
        if m % d:
            continue
        s_tile = 128 * d
        if s_tile > max_tile:
            break
        x_bytes = 2 * b_tile * c * s_tile * itemsize        # double-buffered x block
        if x_bytes + fixed_bytes <= budget:
            best = s_tile
    return best


def wgap_forward(
    x,
    fc_weight,
    fc_bias,
    *,
    batch_tile=None,
    max_spatial_tile=8192,
    vmem_tile_budget=40 << 20,
):
    """x: (B, C, H, W); fc_weight: (classes, C); fc_bias: (classes,). Returns f32 (B, classes)."""
    B, C, H, W = x.shape
    classes = fc_weight.shape[0]
    S = H * W
    itemsize = jnp.dtype(x.dtype).itemsize

    # ---- class-dim padding (lane-dense output / clean MXU N). -----------------
    # NOTE: under jit with the FC params as constants this pad/transpose folds
    # away; in a training step keep the padded transposed weight as a buffer.
    n_pad = ((classes + 127) // 128) * 128
    w_t = jnp.zeros((C, n_pad), fc_weight.dtype).at[:, :classes].set(fc_weight.T)
    b2 = jnp.zeros((1, n_pad), fc_bias.dtype).at[:, :classes].set(
        fc_bias.reshape(1, classes)
    )

    # ---- spatial layout: lane-dense, padded to a multiple of 128. -------------
    x3 = x.reshape(B, C, S)
    s_pad = ((S + 127) // 128) * 128
    if s_pad != S:
        x3 = jnp.pad(x3, ((0, 0), (0, 0), (0, s_pad - S)))  # zeros don't change the sum

    # ---- batch tile: big enough to amortize per-step overhead, but keep ------
    # ---- >= 2 batch tiles so v7x's two TensorCores both get work. ------------
    if batch_tile is None:
        desired = 16 if itemsize <= 2 else 8
        batch_tile = _largest_divisor_leq(B, min(desired, max(1, B // 2)))
    assert B % batch_tile == 0, "batch_tile must divide B"
    b_tile = batch_tile

    # ---- spatial tile from an explicit VMEM budget (v7x = 64 MiB physical). ---
    w_bytes = (
        C * n_pad * jnp.dtype(fc_weight.dtype).itemsize
        + n_pad * jnp.dtype(fc_bias.dtype).itemsize        # single-buffered (Buffered(1))
    )
    acc_bytes = b_tile * C * 4
    out_bytes = 2 * b_tile * n_pad * 4
    fixed_bytes = w_bytes + acc_bytes + out_bytes
    s_tile = _pick_spatial_tile(
        s_pad, b_tile, C, itemsize, fixed_bytes, vmem_tile_budget, max_spatial_tile
    )

    need = 2 * b_tile * C * s_tile * itemsize + fixed_bytes
    vmem_limit = int(min(max(need + (8 << 20), 32 << 20), 56 << 20))

    grid = (B // b_tile, s_pad // s_tile)  # reduction (spatial) axis MUST be last

    out = pl.pallas_call(
        functools.partial(_wgap_kernel, inv_hw=1.0 / float(S)),
        out_shape=jax.ShapeDtypeStruct((B, 1, n_pad), jnp.float32),
        grid_spec=pltpu.PrefetchScalarGridSpec(
            num_scalar_prefetch=0,
            grid=grid,
            in_specs=[
                pl.BlockSpec((b_tile, C, s_tile), lambda b, s: (b, 0, s)),
                # Constant-index params: single buffer (second pipeline buffer is waste).
                pl.BlockSpec((C, n_pad), lambda b, s: (0, 0),
                             pipeline_mode=pl.Buffered(1)),
                pl.BlockSpec((1, n_pad), lambda b, s: (0, 0),
                             pipeline_mode=pl.Buffered(1)),
            ],
            out_specs=pl.BlockSpec((b_tile, 1, n_pad), lambda b, s: (b, 0, 0)),
            scratch_shapes=[pltpu.VMEM((b_tile, C), jnp.float32)],
        ),
        compiler_params=pltpu.CompilerParams(
            dimension_semantics=("parallel", "arbitrary"),
            vmem_limit_bytes=vmem_limit,
        ),
    )(x3, w_t, b2)

    # Drop the class padding (and the singleton dim used for clean out layout).
    return out.reshape(B, n_pad)[:, :classes]


if __name__ == "__main__":
    # Small shapes consistent with the module: B=2, in_channels=4, H=W=16, classes=3.
    B, C, H, W = 2, 4, 16, 16
    classes = 3

    key = jax.random.PRNGKey(0)
    kx, kw, kb = jax.random.split(key, 3)

    x = jax.random.normal(kx, (B, C, H, W), dtype=jnp.float32)
    fc_weight = jax.random.normal(kw, (classes, C), dtype=jnp.float32) * 0.1
    fc_bias = jax.random.normal(kb, (classes,), dtype=jnp.float32) * 0.1

    ref = jnp.mean(x, axis=(2, 3)) @ fc_weight.T + fc_bias

    # Default path (auto tile sizing).
    out = wgap_forward(x, fc_weight, fc_bias)
    out = jax.block_until_ready(out)
    assert out.shape == (B, classes)
    assert jnp.allclose(out, ref, atol=1e-5, rtol=1e-5)

    # Multi-step spatial reduction path (forced small spatial tile).
    out2 = jax.block_until_ready(
        wgap_forward(x, fc_weight, fc_bias, max_spatial_tile=128)
    )
    assert jnp.allclose(out2, ref, atol=1e-5, rtol=1e-5)

    # Non-128-divisible spatial size -> zero-padding path (H=W=5, S=25).
    x_odd = jax.random.normal(kx, (B, C, 5, 5), dtype=jnp.float32)
    ref_odd = jnp.mean(x_odd, axis=(2, 3)) @ fc_weight.T + fc_bias
    out_odd = jax.block_until_ready(wgap_forward(x_odd, fc_weight, fc_bias))
    assert jnp.allclose(out_odd, ref_odd, atol=1e-5, rtol=1e-5)

    print("KERNEL_OK")
</pallas_src>

<mosaic_0001>
module attributes {stable_mosaic.version = 11 : i64} {
  func.func @_wgap_kernel(%arg0: i32, %arg1: i32, %arg2: memref<1x4x256xf32, #tpu.memory_space<vmem>>, %arg3: memref<4x128xf32, #tpu.memory_space<vmem>>, %arg4: memref<1x128xf32, #tpu.memory_space<vmem>>, %arg5: memref<1x1x128xf32, #tpu.memory_space<vmem>>, %arg6: memref<1x4xf32, #tpu.memory_space<vmem>>) attributes {dimension_semantics = [#tpu.dimension_semantics<parallel>, #tpu.dimension_semantics<arbitrary>], iteration_bounds = array<i64: 2, 1>, scalar_prefetch = 0 : i64, scratch_operands = 1 : i64, tpu.core_type = #tpu.core_type<tc>, window_params = [{transform_indices = @transform_0, window_bounds = array<i64: 1, 4, 256>}, {pipeline_mode = #tpu.pipeline_mode<synchronous>, transform_indices = @transform_1, window_bounds = array<i64: 4, 128>}, {pipeline_mode = #tpu.pipeline_mode<synchronous>, transform_indices = @transform_2, window_bounds = array<i64: 1, 128>}, {transform_indices = @transform_3, window_bounds = array<i64: 1, 1, 128>}]} {
    %c0_i32 = arith.constant 0 : i32
    %0 = arith.cmpi eq, %arg1, %c0_i32 : i32
    %1 = arith.extui %0 : i1 to i32
    %c0_i32_0 = arith.constant 0 : i32
    %2 = arith.cmpi ne, %1, %c0_i32_0 : i32
    scf.if %2 {
      %cst_9 = arith.constant 0.000000e+00 : f32
      %11 = vector.broadcast %cst_9 : f32 to vector<1x4xf32>
      %c0_10 = arith.constant 0 : index
      %c0_11 = arith.constant 0 : index
      %12 = vector.load %arg6[%c0_10, %c0_11] : memref<1x4xf32, #tpu.memory_space<vmem>>, vector<1x4xf32>
      tpu.vector_store %arg6[%c0_10, %c0_11], %11 {strides = array<i32>} : memref<1x4xf32, #tpu.memory_space<vmem>>, vector<1x4xf32>,
    } else {
    }
    %c0 = arith.constant 0 : index
    %c0_1 = arith.constant 0 : index
    %3 = vector.load %arg6[%c0, %c0_1] : memref<1x4xf32, #tpu.memory_space<vmem>>, vector<1x4xf32>
    %c0_2 = arith.constant 0 : index
    %c0_3 = arith.constant 0 : index
    %c0_4 = arith.constant 0 : index
    %4 = vector.load %arg2[%c0_2, %c0_3, %c0_4] : memref<1x4x256xf32, #tpu.memory_space<vmem>>, vector<1x4x256xf32>
    %cst = arith.constant dense<0.000000e+00> : vector<1x4xf32>
    %5 = vector.multi_reduction <add>, %4, %cst [2] : vector<1x4x256xf32> to vector<1x4xf32>
    %6 = arith.addf %3, %5 : vector<1x4xf32>
    %c0_5 = arith.constant 0 : index
    %c0_6 = arith.constant 0 : index
    %7 = vector.load %arg6[%c0_5, %c0_6] : memref<1x4xf32, #tpu.memory_space<vmem>>, vector<1x4xf32>
    tpu.vector_store %arg6[%c0_5, %c0_6], %6 {strides = array<i32>} : memref<1x4xf32, #tpu.memory_space<vmem>>, vector<1x4xf32>,
    %c0_i32_7 = arith.constant 0 : i32
    %8 = arith.cmpi eq, %arg1, %c0_i32_7 : i32
    %9 = arith.extui %8 : i1 to i32
    %c0_i32_8 = arith.constant 0 : i32
    %10 = arith.cmpi ne, %9, %c0_i32_8 : i32
    scf.if %10 {
      %c0_9 = arith.constant 0 : index
      %c0_10 = arith.constant 0 : index
      %11 = vector.load %arg6[%c0_9, %c0_10] : memref<1x4xf32, #tpu.memory_space<vmem>>, vector<1x4xf32>
      %cst_11 = arith.constant 3.906250e-03 : f32
      %12 = vector.broadcast %cst_11 : f32 to vector<1x4xf32>
      %13 = arith.mulf %11, %12 : vector<1x4xf32>
      %c0_12 = arith.constant 0 : index
      %c0_13 = arith.constant 0 : index
      %14 = vector.load %arg3[%c0_12, %c0_13] : memref<4x128xf32, #tpu.memory_space<vmem>>, vector<4x128xf32>
      %cst_14 = arith.constant dense<0.000000e+00> : vector<1x128xf32>
      %15 = tpu.matmul %13, %14, %cst_14 {dimension_numbers = #tpu.dot_dimension_numbers<[1], [0], [0], [1], [0, 0, 1, 1], [], []>} : vector<1x4xf32>, vector<4x128xf32>, vector<1x128xf32> -> vector<1x128xf32>
      %c0_15 = arith.constant 0 : index
      %c0_16 = arith.constant 0 : index
      %16 = vector.load %arg4[%c0_15, %c0_16] : memref<1x128xf32, #tpu.memory_space<vmem>>, vector<1x128xf32>
      %17 = arith.addf %15, %16 : vector<1x128xf32>
      %18 = vector.shape_cast %17 : vector<1x128xf32> to vector<1x1x128xf32>
      %c0_17 = arith.constant 0 : index
      %c0_18 = arith.constant 0 : index
      %c0_19 = arith.constant 0 : index
      %19 = vector.load %arg5[%c0_17, %c0_18, %c0_19] : memref<1x1x128xf32, #tpu.memory_space<vmem>>, vector<1x1x128xf32>
      tpu.vector_store %arg5[%c0_17, %c0_18, %c0_19], %18 {strides = array<i32>} : memref<1x1x128xf32, #tpu.memory_space<vmem>>, vector<1x1x128xf32>,
    } else {
    }
    return
  }
  func.func @transform_0(%arg0: i32, %arg1: i32) -> (i32, i32, i32) {
    %c0_i32 = arith.constant 0 : i32
    %c0_i32_0 = arith.constant 0 : i32
    return %arg0, %c0_i32, %arg1 : i32, i32, i32
  }
  func.func @transform_1(%arg0: i32, %arg1: i32) -> (i32, i32) {
    %c0_i32 = arith.constant 0 : i32
    %c0_i32_0 = arith.constant 0 : i32
    %c0_i32_1 = arith.constant 0 : i32
    return %c0_i32, %c0_i32_0 : i32, i32
  }
  func.func @transform_2(%arg0: i32, %arg1: i32) -> (i32, i32) {
    %c0_i32 = arith.constant 0 : i32
    %c0_i32_0 = arith.constant 0 : i32
    %c0_i32_1 = arith.constant 0 : i32
    return %c0_i32, %c0_i32_0 : i32, i32
  }
  func.func @transform_3(%arg0: i32, %arg1: i32) -> (i32, i32, i32) {
    %c0_i32 = arith.constant 0 : i32
    %c0_i32_0 = arith.constant 0 : i32
    %c0_i32_1 = arith.constant 0 : i32
    return %arg0, %c0_i32, %c0_i32_0 : i32, i32, i32
  }
}

</mosaic_0001>

<bundles_post_ra>
// kernel: tpu_custom_call.1
= control target key start
LH: loop header
LB: loop body
LE: loop exit
PB: predicated region body
PF: predicated region fallthrough
CT: control target
= control target key end

     0   :  { %8 = vsyncpa [#allocation4], 0  ;;  %s932_s0 = inlined_call_operand.hbm [shape: f32[2,4,256], index: 0, kind: input, shape index: {}]   ;;  %s933_s1 = inlined_call_operand.hbm [shape: f32[4,128], index: 1, kind: input, shape index: {}]   ;;  %s934_s2 = inlined_call_operand.vmem [shape: f32[1,128], index: 2, kind: input, shape index: {}]   ;;  %s935_s3 = inlined_call_operand.hbm [shape: f32[2,1,128], index: 3, kind: output, shape index: {}]  }
   0x1   :  { %10 = vsyncpa [#allocation4 + $0x1], 0 }
   0x2   :  { %11 = vsyncpa [#allocation7], 0 }
   0x3   :  { %12 = vsyncpa [#allocation5], 0 }
   0x4   :  { %14 = vsyncpa [#allocation5 + $0x1], 0  ;;  %s756_s12 = smov 0   ;;  %s758_s13 = smov 0  }
   0x5   :  { %s760_s14 = smov 0   ;;  %s762_s15 = smov 0  }
   0x6   :  { %s764_s16 = smov 0   ;;  %s766_s17 = smov 0  }
   0x7 LB: > { %s486_s18 = sadd.s32 4294967295, %s727_s17   ;;  %s487_s19 = sadd.s32 4294967294, %s727_s17   ;;  %s727_s17 = sphi %s766_s17, %s20_s17   ;;  %s723_s16 = sphi %s764_s16, %s952_s16   ;;  %s719_s15 = sphi %s762_s15, %s951_s15   ;;  %s715_s14 = sphi %s760_s14, %s950_s14   ;;  %s711_s13 = sphi %s758_s13, %s949_s13   ;;  %s707_s12 = sphi %s756_s12, %s948_s12  }
   0x8   : > { %p54_p0 = scmp.ne.s32.totalorder %s711_s13, %s707_s12  ;;  %p790_p1 = scmp.eq.s32.totalorder %s486_s18, 0 }
   0x9   : > { %p794_p2 = scmp.eq.s32.totalorder %s486_s18, 1  ;;  %p126_p3 = scmp.eq.s32.totalorder %s487_s19, 1 }
   0xa   : > { %p800_p4 = por %p790_p1, %p54_p0  ;;  %p488_p5 = scmp.ge.s32.totalorder %s727_s17, 1 }
   0xb   : > { %p805_p6 = por %p126_p3, %p54_p0  ;;  %p133_p7 = scmp.lt.s32.totalorder %s727_s17, 3 }
   0xc   : > { %s939_s22 = scalar_select %p800_p4, 1, 0 }
   0xd   : > { %s940_s23 = scalar_select %p805_p6, 1, 0 }
   0xe   : > { %p810_p8 = pnand %p488_p5, %p133_p7  ;;  %s729_s25 = smov [#allocation6]  }
   0xf   : > { %s146_s26 = sshll.u32 %s729_s25, 4  ;;  %s32_s28 = sadd.s32 1, %s723_s16  ;;  %s147_s26 = int_to_ptr.vmem [resolvable:$true] %s146_s26 }
  0x10   : > { %p518_p10 = pneg %p810_p8  ;;  %s41_s29 = sadd.s32 1, %s715_s14 }
  0x11   : > { %p34_p12 = scmp.ge.s32.totalorder %s32_s28, 2  ;;  %s600_s30 = scalar_lea.vmem %s147_s26, 64 }
  0x12   : > { %p819_p11 = pnand %p518_p10, %p790_p1  ;;  %p601_p0 = scmp.ne.s32.totalorder %s147_s26, %s600_s30 }
  0x13   : > { %p608_p7 = scmp.lt.s32.totalorder %s147_s26, %s147_s26  ;;  %p609_p6 = scmp.lt.s32.totalorder %s600_s30, %s600_s30 }
  0x14   : > { %p591_p13 = pneg %p819_p11 }
  0x15   : > { %p610_p9 = por %p609_p6, %p608_p7 }
  0x16   : > { %p603_p3 = pnand %p601_p0, %p591_p13 }
  0x18   : > { %p604_p5 = pneg %p603_p3 }
  0x1a   : > { %p611_p4 = pnand %p610_p9, %p604_p5 }
  0x1c   : > { %614 = shalt.err (!%p611_p4)
}
  0x1d   : > { %521 = dma.hbm_to_vmem [thread:$0]  (!%p819_p11), %s933_s1, 64, %s147_s26, [#allocation7]  }
  0x1e   : > { %s954_s28 = smov (%p34_p12, %s32_s28), 0  ;;  %p48_p6 = scmp.ne.s32.totalorder %s715_s14, %s711_s13 }
  0x1f   : > { %p49_p4 = scmp.eq.s32.totalorder %s727_s17, 0  ;;  %s36_s6 = ssub.s32 %s723_s16, %s954_s28 }
  0x20   : > { %p531_p9 = scmp.lt.s32.totalorder %s727_s17, 2  ;;  %p39_p10 = scmp.eq.s32.totalorder %s36_s6, 0 }
  0x21   : > { %p50_p13 = por %p49_p4, %p48_p6  ;;  %p842_p0 = por %p794_p2, %p48_p6 }
  0x22   : > { %s160_s8 = sand.u32 1, %s715_s14   ;;  %s502_s11 = sshll.u32 %s723_s16, 7 }
  0x23   : > { %s848_s9 = scalar_select %p39_p10, %s715_s14, %s41_s29  }
  0x24   : > { %s491_s10 = sshll.u32 %s160_s8, 3  ;;  %s172_s25 = scalar_lea.hbm %s932_s0, %s502_s11 }
  0x25   : > { %s164_s26 = scalar_lea.vmem [#allocation3], %s491_s10  ;;  %p854_p11 = pnand %p531_p9, %p50_p13 }
  0x26   : > { %s174_s27 = sshll.u32 %s164_s26, 4  ;;  %s161_s21 = scalar_lea.sflag [#allocation4], %s160_s8  ;;  %s175_s27 = int_to_ptr.vmem [resolvable:$true] %s174_s27 }
  0x27   : > { %p617_p2 = pneg %p854_p11  ;;  %s628_s4 = scalar_lea.vmem %s175_s27, 128 }
  0x28   : > { %p629_p12 = scmp.ne.s32.totalorder %s175_s27, %s628_s4  ;;  %s730_s29 = smov [#allocation3]  }
  0x29   : > { %s633_s5 = sshll.u32 %s730_s29, 4  ;;  %s634_s5 = int_to_ptr.vmem [resolvable:$false] %s633_s5 }
  0x2a   : > { %p631_p3 = pnand %p629_p12, %p617_p2  ;;  %s635_s6 = scalar_lea.vmem %s634_s5, 256 }
  0x2b   : > { %p636_p7 = scmp.lt.s32.totalorder %s175_s27, %s634_s5  ;;  %p637_p6 = scmp.lt.s32.totalorder %s635_s6, %s628_s4 }
  0x2c   : > { %p632_p5 = pneg %p631_p3 }
  0x2d   : > { %p638_p4 = por %p637_p6, %p636_p7 }
  0x2f   : > { %p639_p10 = pnand %p638_p4, %p632_p5 }
  0x31   : > { %642 = shalt.err (!%p639_p10)
}
  0x32   : > { %525 = dma.hbm_to_vmem [thread:$0]  (!%p854_p11), %s172_s25, 128, %s175_s27, %s161_s21  }
  0x33   : > { %183 = sbr.rel (%p810_p8) target bundleno = 563 (0x233), region = 32  ;;  %s865_s8 = sand.u32 (!%p810_p8), 1, %s711_s13  }
  0x34   : > { %s495_s10 = sshll.u32 (!%p810_p8), %s865_s8, 3  ;;  %s186_s11 = scalar_lea.sflag (!%p810_p8), [#allocation4], %s865_s8 }
  0x35   : > { %s189_s18 = scalar_lea.vmem (!%p810_p8), [#allocation3], %s495_s10  ;;  %p945_p9 = scmp.ne.s32.totalorder (!%p810_p8), %s939_s22, 0 }
  0x38   : > { %694 = dma.done.wait (%p945_p9), %s186_s11, 128  }
  0x39   : > { %696 = vsyncadd (%p945_p9), %s186_s11, 4294967168 }
  0x3a   : > { %698 = dma.done.wait (%p790_p1), [#allocation7], 64  }
  0x3b   : > { %700 = vsyncadd (%p790_p1), [#allocation7], 4294967232  ;;  %vm227_vm0 = vcmask 1043456   ;;  %v223_v0 = vld [vmem:[%s189_s18] sm:$0xff]  ;;  %v731_v5 = vmov 0   ;;  %v234_v6 = vlaneseq  ;;  %vm220_vm1 = vcmask 24576  }
  0x3c   : > { %v225_v1 = vcombine.high %v223_v0, %v223_v0  ;;  %v228_v2 = vsel %vm227_vm0, %v223_v0, 0.0  ;;  %587 = vset.pattern.permute.xlu0 %v731_v5  ;;  %v732_v10 = vmov 1966171168   ;;  %v733_v27 = vmov 0.0   ;;  %v306_v30 = vld [vmem:[#allocation6] sm:$0xf] }
  0x3d   : > { %v235_v7 = vshrl.u32 %v234_v6, 7  ;;  %v278_v8 = vand.u32 127, %v234_v6  ;;  %v253_v11 = vunpack.c.l.s4 %v732_v10  ;;  %221 = vst.msk [vmem:[#allocation2] sm:$0x1] %vm220_vm1, %v733_v27  ;;  %505 = vmatprep.subr.mxu0 %v733_v27  ;;  %vm734_vm2 = vmmov 0   ;;  %s499_s24 = sshll.u32 %s719_s15, 4 }
  0x3e   : > { %v229_v3 = vsel %vm227_vm0, %v225_v1, 0.0  ;;  %506 = vmatpush3.msk.msra.mxu0 %vm227_vm0, %v306_v30  ;;  %507 = vmatprep.mubr.msk.f32.mxu0 %vm734_vm2, %v733_v27  ;;  %vm308_vm3 = vcmask 31744   ;;  %v307_v39 = vld [vmem:[%s934_s2] sm:$0x1]  ;;  %s214_s19 = scalar_lea.vmem [#allocation8], %s865_s8  ;;  %s890_s30 = scalar_lea.hbm %s935_s3, %s499_s24 }
  0x3f   : > { %v230_v4 = vadd.f32 %v229_v3, %v228_v2  ;;  %v281_v9 = vsub.s32 %v278_v8, %v235_v7  ;;  %v254_v12 = vunpack.c.0.s8 %v253_v11  ;;  %v236_v13 = vsub.s32 0, %v235_v7  ;;  %s399_s25 = sshll.u32 %s214_s19, 4  ;;  %s387_s21 = scalar_lea.sflag [#allocation5], %s865_s8  ;;  %s400_s25 = int_to_ptr.vmem [resolvable:$true] %s399_s25 }
  0x40   : > { %v240_v14 = vsub.s32 1, %v235_v7  ;;  %v244_v15 = vsub.s32 2, %v235_v7  ;;  %v248_v16 = vsub.s32 3, %v235_v7  ;;  %s643_s4 = scalar_lea.vmem %s400_s25, 16  ;;  %s735_s29 = smov [#allocation8]  }
  0x41   : > { %231 = vadd.xlane.f32.xlu0 %v230_v4  ;;  %v257_v18 = vsub.s32 %v254_v12, %v235_v7  ;;  %p644_p1 = scmp.ne.s32.totalorder %s400_s25, %s643_s4  ;;  %s647_s15 = sshll.u32 %s735_s29, 4  ;;  %s648_s15 = int_to_ptr.vmem [resolvable:$false] %s647_s15 }
  0x42   : > { %s649_s5 = scalar_lea.vmem %s648_s15, 32  ;;  %p650_p11 = scmp.lt.s32.totalorder %s400_s25, %s648_s15 }
  0x43   : > { %p645_p8 = pnand %p644_p1, %p842_p0  ;;  %p651_p2 = scmp.lt.s32.totalorder %s649_s5, %s643_s4 }
  0x44   : > { %v222_v34 = vld [vmem:[#allocation2] sm:$0x1] }
  0x45   : > { %p646_p13 = pneg %p645_p8  ;;  %p652_p12 = por %p651_p2, %p650_p11 }
  0x47   : > { %p653_p3 = pnand %p652_p12, %p646_p13 }
  0xca   : > { %v232_v17 = vpop.xlane.xlu0 %231 }
  0xcb   : > { %v237_v19 = vrot.slane %v232_v17, %v236_v13  ;;  %v241_v20 = vrot.slane %v232_v17, %v240_v14  ;;  %v245_v21 = vrot.slane %v232_v17, %v244_v15  ;;  %v249_v22 = vrot.slane %v232_v17, %v248_v16 }
  0xcd   : > { %v250_v23 = vcombine.low %v237_v19, %v241_v20  ;;  %v251_v24 = vcombine.low %v245_v21, %v249_v22 }
  0xcf   : > { %v258_v25 = vrot.slane %v250_v23, %v257_v18  ;;  %v265_v26 = vrot.slane %v251_v24, %v257_v18 }
  0xd1   : > { %v266_v28 = vcombine.low %v258_v25, %v265_v26 }
  0xd3   : > { %v273_v29 = vrot.slane %v266_v28, %v257_v18 }
  0xd5   : > { %275 = vperm.xlu0 %587, %v273_v29  }
 0x150   : > { %v276_v31 = vpop.permute.xlu0 %275 }
 0x151   : > { %v282_v32 = vrot.slane %v276_v31, %v281_v9 }
 0x153   : > { %v289_v33 = vrot.slane %v282_v32, %v257_v18 }
 0x155   : > { %v296_v35 = vrot.slane %v289_v33, %v257_v18 }
 0x157   : > { %v298_v36 = vadd.f32 %v296_v35, %v222_v34 }
 0x159   : > { %300 = vst.msk [vmem:[#allocation2] sm:$0x1] %vm220_vm1, %v298_v36 }
 0x160   : > { %v304_v37 = vld [vmem:[#allocation2] sm:$0x1] }
 0x161   : > { %v305_v38 = vmul.f32 0.00390625, %v304_v37 }
 0x163   : > { %508 = vmatmul.mubr.msk.f32.vlgmr.msra.gmra.mxu0 %vm308_vm3, %v305_v38 }
 0x223   : > { %v381_v40 = vpop.f32.mrf.mxu0 }
 0x224   : > { %v382_v41 = vadd.f32 %v381_v40, %v307_v39 }
 0x225   : > { %v509_v42 = vpop.f32.mrf.mxu0 }
 0x226   : > { %385 = vst [vmem:[%s214_s19] sm:$0x1] %v382_v41 }
 0x227   : > { %656 = shalt.err (!%p653_p3)
}
 0x228   : > { %s657_s6 = scalar_lea.hbm %s890_s30, 16  ;;  %s661_s11 = scalar_lea.hbm %s935_s3, 32 }
 0x229   : > { %p658_p5 = scmp.ne.s32.totalorder %s890_s30, %s657_s6  ;;  %p662_p4 = scmp.lt.s32.totalorder %s890_s30, %s935_s3 }
 0x22a   : > { %p663_p10 = scmp.lt.s32.totalorder %s661_s11, %s657_s6 }
 0x22b   : > { %p659_p7 = pnand %p658_p5, %p842_p0 }
 0x22c   : > { %p664_p9 = por %p663_p10, %p662_p4 }
 0x22d   : > { %p660_p6 = pneg %p659_p7 }
 0x22f   : > { %p665_p1 = pnand %p664_p9, %p660_p6 }
 0x231   : > { %668 = shalt.err (!%p665_p1)
}
 0x232   : > { %516 = dma.vmem_to_hbm [thread:$0]  (%p842_p0), %s400_s25, 16, %s890_s30, %s387_s21  }
 0x233 PF: > { %s411_s22 = sand.u32 1, %s707_s12   ;;  %p946_p8 = scmp.ne.s32.totalorder %s940_s23, 0 }
 0x234   : > { %p947_p13 = scmp.ge.s32.totalorder %s727_s17, 2  ;;  %s412_s24 = scalar_lea.sflag [#allocation5], %s411_s22 }
 0x236   : > { %p527_p11 = pnand %p947_p13, %p946_p8 }
 0x238   : > { %p528_p2 = pneg %p527_p11 }
 0x23a   : > { %702 = dma.done.wait (%p528_p2), %s412_s24, 16  }
 0x23b   : > { %704 = vsyncadd (%p528_p2), %s412_s24, 4294967280  ;;  %s20_s17 = sadd.s32 1, %s727_s17   ;;  %s948_s12 = smov %s711_s13 }
 0x23c   : > { %p17_p12 = scmp.ge.s32.totalorder %s20_s17, 4   ;;  %s949_s13 = smov %s715_s14 }
 0x23d   : > { %s950_s14 = smov %s848_s9  ;;  %s951_s15 = smov %s723_s16 }
 0x23e   : > { %s952_s16 = smov %s954_s28  ;;  %19 = sbr.rel (!%p17_p12) target bundleno = 7 (0x7), region = 89 }
 0x243   :  { %416 = vsyncpa [#allocation4], 1 }
 0x244   :  { %418 = vsyncpa [#allocation4 + $0x1], 1 }
 0x245   :  { %419 = vsyncpa [#allocation7], 1 }
 0x246   :  { %420 = vsyncpa [#allocation5], 1 }
 0x247   :  { %422 = vsyncpa [#allocation5 + $0x1], 1 }

</bundles_post_ra>
